<compile_context>
chip_gen: v7x
topology: tpu7x:2x2x1
jax: 0.10.0
libtpu: 0.0.40
codegen_flags: <defaults>
</compile_context>

<pallas_src>
import jax
import jax.numpy as jnp
from jax import lax
from jax.experimental import pallas as pl
from jax.experimental.pallas import tpu as pltpu


def _round_up(a, b):
    return (a + b - 1) // b * b


def _pick_tile(dim, max_tile, align):
    """Return (tile, padded_dim).

    Small dims use a full-extent block (no padding). Large dims pick the largest
    halving of max_tile (always a multiple of `align`) whose zero-padding waste is
    small, falling back to `align`.
    """
    if dim <= max_tile:
        return dim, dim
    t = max_tile
    while t >= align:
        padded = _round_up(dim, t)
        if padded - dim <= max(align, dim // 4):
            return t, padded
        t //= 2
    return align, _round_up(dim, align)


def _act_linear_kernel_single_k(x_ref, w_ref, b_ref, out_ref):
    # x_ref: (tm, K) | w_ref: (tn, K) | b_ref: (1, tn) | out_ref: (tm, tn)
    acc = lax.dot_general(
        x_ref[...],
        w_ref[...],
        dimension_numbers=(((1,), (1,)), ((), ())),
        preferred_element_type=jnp.float32,
    )
    out_ref[...] = (acc + b_ref[...].astype(jnp.float32)).astype(out_ref.dtype)


def _act_linear_kernel_multi_k(x_ref, w_ref, b_ref, out_ref, acc_ref):
    # x_ref: (tm, tk) | w_ref: (tn, tk) | b_ref: (1, tn) | out_ref/acc_ref: (tm, tn)
    k = pl.program_id(2)

    @pl.when(k == 0)
    def _():
        acc_ref[...] = jnp.zeros_like(acc_ref)

    # Contract x dim 1 with weight dim 1  ==  x @ W.T, no transposed copy needed.
    acc_ref[...] += lax.dot_general(
        x_ref[...],
        w_ref[...],
        dimension_numbers=(((1,), (1,)), ((), ())),
        preferred_element_type=jnp.float32,
    )

    @pl.when(k == pl.num_programs(2) - 1)
    def _():
        out_ref[...] = (acc_ref[...] + b_ref[...].astype(jnp.float32)).astype(
            out_ref.dtype
        )


def act_linear(x, weight, bias=None, *, tm_max=256, tn_max=512, tk_max=1024):
    """
    x      : (..., in_features)            -- any leading dims
    weight : (out_features, in_features)   -- PyTorch nn.Linear layout (no transpose)
    bias   : (out_features,) or None
    Returns (out, recorded_acts):
      out            : (..., out_features)
      recorded_acts  : (prod(leading), in_features)  == x.view(-1, in_features)
    """
    *lead, K = x.shape
    N, K2 = weight.shape
    assert K == K2, "in_features mismatch"
    M = 1
    for d in lead:
        M *= d

    x2 = x.reshape(M, K)
    recorded = x2  # activation_norms entry == x.view(-1, in_features); no kernel copy.

    if bias is None:
        bias = jnp.zeros((N,), dtype=x.dtype)

    # Tile selection (full-extent blocks for small dims, 8/128-aligned tiles +
    # bounded zero-padding for large ones).
    tm, Mp = _pick_tile(M, tm_max, 8)
    tn, Np = _pick_tile(N, tn_max, 128)
    tk, Kp = _pick_tile(K, tk_max, 128)

    xp = x2 if (Mp == M and Kp == K) else jnp.pad(x2, ((0, Mp - M), (0, Kp - K)))
    wp = weight if (Np == N and Kp == K) else jnp.pad(
        weight, ((0, Np - N), (0, Kp - K))
    )
    bp = (bias if Np == N else jnp.pad(bias, (0, Np - N))).reshape(1, Np)

    nk = Kp // tk
    itemsize = jnp.dtype(x.dtype).itemsize
    cost = pl.CostEstimate(
        flops=2 * M * N * K,
        transcendentals=0,
        bytes_accessed=(M * K + N * K + M * N) * itemsize,
    )

    if nk == 1:
        # Single-K-step fast path: no scratch accumulator, bias fused into the store.
        out_p = pl.pallas_call(
            _act_linear_kernel_single_k,
            out_shape=jax.ShapeDtypeStruct((Mp, Np), x.dtype),
            grid_spec=pltpu.PrefetchScalarGridSpec(
                num_scalar_prefetch=0,
                grid=(Mp // tm, Np // tn),
                in_specs=[
                    pl.BlockSpec((tm, Kp), lambda i, j: (i, 0)),  # x tile
                    pl.BlockSpec((tn, Kp), lambda i, j: (j, 0)),  # weight tile (out,in)
                    pl.BlockSpec((1, tn), lambda i, j: (0, j)),   # bias stripe
                ],
                out_specs=pl.BlockSpec((tm, tn), lambda i, j: (i, j)),
            ),
            compiler_params=pltpu.CompilerParams(
                dimension_semantics=("parallel", "parallel"),
            ),
            cost_estimate=cost,
        )(xp, wp, bp)
    else:
        out_p = pl.pallas_call(
            _act_linear_kernel_multi_k,
            out_shape=jax.ShapeDtypeStruct((Mp, Np), x.dtype),
            grid_spec=pltpu.PrefetchScalarGridSpec(
                num_scalar_prefetch=0,
                grid=(Mp // tm, Np // tn, nk),
                in_specs=[
                    pl.BlockSpec((tm, tk), lambda i, j, k: (i, k)),  # x tile
                    pl.BlockSpec((tn, tk), lambda i, j, k: (j, k)),  # weight tile
                    pl.BlockSpec((1, tn), lambda i, j, k: (0, j)),   # bias stripe
                ],
                out_specs=pl.BlockSpec((tm, tn), lambda i, j, k: (i, j)),
                scratch_shapes=[pltpu.VMEM((tm, tn), jnp.float32)],
            ),
            compiler_params=pltpu.CompilerParams(
                dimension_semantics=("parallel", "parallel", "arbitrary"),
            ),
            cost_estimate=cost,
        )(xp, wp, bp)

    out = out_p[:M, :N].reshape(*lead, N)
    return out, recorded


if __name__ == "__main__":
    key = jax.random.PRNGKey(0)
    kx, kw, kb = jax.random.split(key, 3)

    # Small shapes consistent with the module's forward (batch, seq, in_features).
    batch, seq, in_features, out_features = 2, 8, 64, 32
    x = jax.random.normal(kx, (batch, seq, in_features), dtype=jnp.float32)
    weight = jax.random.normal(kw, (out_features, in_features), dtype=jnp.float32) * 0.05
    bias = jax.random.normal(kb, (out_features,), dtype=jnp.float32) * 0.01

    out, recorded = act_linear(x, weight, bias)
    out = jax.block_until_ready(out)
    recorded = jax.block_until_ready(recorded)

    ref_out = x @ weight.T + bias
    ref_rec = x.reshape(-1, in_features)
    assert out.shape == (batch, seq, out_features)
    assert recorded.shape == (batch * seq, in_features)
    assert jnp.allclose(out, ref_out, atol=1e-5, rtol=1e-5)
    assert jnp.allclose(recorded, ref_rec)

    # Second check: ragged M (M=300 -> tm=64, Mp=320) and forced K reduction
    # (tk_max=128 with K=256 -> 2 K-steps) to exercise the accumulator path.
    k2x, k2w, k2b = jax.random.split(jax.random.PRNGKey(1), 3)
    b2, s2, in2, out2 = 3, 100, 256, 200
    x2 = jax.random.normal(k2x, (b2, s2, in2), dtype=jnp.float32)
    w2 = jax.random.normal(k2w, (out2, in2), dtype=jnp.float32) * 0.02
    bia2 = jax.random.normal(k2b, (out2,), dtype=jnp.float32) * 0.01

    o2, r2 = act_linear(x2, w2, bia2, tk_max=128)
    o2 = jax.block_until_ready(o2)
    ref2 = x2 @ w2.T + bia2
    assert o2.shape == (b2, s2, out2)
    assert r2.shape == (b2 * s2, in2)
    assert jnp.allclose(o2, ref2, atol=1e-4, rtol=1e-4)

    print("KERNEL_OK")
</pallas_src>

<mosaic_0001>
module attributes {stable_mosaic.version = 11 : i64} {
  func.func @_act_linear_kernel_single_k(%arg0: i32, %arg1: i32, %arg2: memref<16x64xf32, #tpu.memory_space<vmem>>, %arg3: memref<32x64xf32, #tpu.memory_space<vmem>>, %arg4: memref<1x32xf32, #tpu.memory_space<vmem>>, %arg5: memref<16x32xf32, #tpu.memory_space<vmem>>) attributes {dimension_semantics = [#tpu.dimension_semantics<parallel>, #tpu.dimension_semantics<parallel>], iteration_bounds = array<i64: 1, 1>, scalar_prefetch = 0 : i64, scratch_operands = 0 : i64, tpu.core_type = #tpu.core_type<tc>, window_params = [{transform_indices = @transform_0, window_bounds = array<i64: 16, 64>}, {transform_indices = @transform_1, window_bounds = array<i64: 32, 64>}, {transform_indices = @transform_2, window_bounds = array<i64: 1, 32>}, {transform_indices = @transform_3, window_bounds = array<i64: 16, 32>}]} {
    %c0 = arith.constant 0 : index
    %c0_0 = arith.constant 0 : index
    %0 = vector.load %arg2[%c0, %c0_0] : memref<16x64xf32, #tpu.memory_space<vmem>>, vector<16x64xf32>
    %c0_1 = arith.constant 0 : index
    %c0_2 = arith.constant 0 : index
    %1 = vector.load %arg3[%c0_1, %c0_2] : memref<32x64xf32, #tpu.memory_space<vmem>>, vector<32x64xf32>
    %cst = arith.constant dense<0.000000e+00> : vector<16x32xf32>
    %2 = tpu.matmul %0, %1, %cst {dimension_numbers = #tpu.dot_dimension_numbers<[1], [1], [0], [0], [0, 0, 1, 0], [], []>} : vector<16x64xf32>, vector<32x64xf32>, vector<16x32xf32> -> vector<16x32xf32>
    %c0_3 = arith.constant 0 : index
    %c0_4 = arith.constant 0 : index
    %3 = vector.load %arg4[%c0_3, %c0_4] : memref<1x32xf32, #tpu.memory_space<vmem>>, vector<1x32xf32>
    %4 = vector.broadcast %3 : vector<1x32xf32> to vector<16x32xf32>
    %5 = arith.addf %2, %4 : vector<16x32xf32>
    %c0_5 = arith.constant 0 : index
    %c0_6 = arith.constant 0 : index
    %6 = vector.load %arg5[%c0_5, %c0_6] : memref<16x32xf32, #tpu.memory_space<vmem>>, vector<16x32xf32>
    tpu.vector_store %arg5[%c0_5, %c0_6], %5 {strides = array<i32>} : memref<16x32xf32, #tpu.memory_space<vmem>>, vector<16x32xf32>,
    return
  }
  func.func @transform_0(%arg0: i32, %arg1: i32) -> (i32, i32) {
    %c0_i32 = arith.constant 0 : i32
    %c0_i32_0 = arith.constant 0 : i32
    return %arg0, %c0_i32 : i32, i32
  }
  func.func @transform_1(%arg0: i32, %arg1: i32) -> (i32, i32) {
    %c0_i32 = arith.constant 0 : i32
    %c0_i32_0 = arith.constant 0 : i32
    return %arg1, %c0_i32 : i32, i32
  }
  func.func @transform_2(%arg0: i32, %arg1: i32) -> (i32, i32) {
    %c0_i32 = arith.constant 0 : i32
    %c0_i32_0 = arith.constant 0 : i32
    return %c0_i32, %arg1 : i32, i32
  }
  func.func @transform_3(%arg0: i32, %arg1: i32) -> (i32, i32) {
    %c0_i32 = arith.constant 0 : i32
    return %arg0, %arg1 : i32, i32
  }
}

</mosaic_0001>

<bundles_post_ra>
// kernel: tpu_custom_call.1
= control target key start
LH: loop header
LB: loop body
LE: loop exit
PB: predicated region body
PF: predicated region fallthrough
CT: control target
= control target key end

     0   :  { %8 = vsyncpa [#allocation3], 0  ;;  %s357_s0 = inlined_call_operand.hbm [shape: f32[16,64], index: 0, kind: input, shape index: {}]   ;;  %s358_s1 = inlined_call_operand.hbm [shape: f32[32,64], index: 1, kind: input, shape index: {}]   ;;  %s359_s2 = inlined_call_operand.vmem [shape: f32[1,32], index: 2, kind: input, shape index: {}]   ;;  %s360_s3 = inlined_call_operand.hbm [shape: f32[16,32], index: 3, kind: output, shape index: {}]  }
   0x1   :  { %9 = vsyncpa [#allocation6], 0 }
   0x2   :  { %10 = vsyncpa [#allocation4], 0  ;;  %s284_s12 = smov [#allocation2]   ;;  %s212_s16 = scalar_lea.hbm %s357_s0, 256 }
   0x3   :  { %s16_s13 = sshll.u32 %s284_s12, 4  ;;  %p213_p0 = scmp.ne.s32.totalorder %s357_s0, %s212_s16  ;;  %s17_s13 = int_to_ptr.vmem [resolvable:$true] %s16_s13 }
   0x4   :  { %p216_p1 = scmp.lt.u32.totalorder %s212_s16, %s357_s0 }
   0x6   :  { %p218_p2 = pnand %p216_p1, %p213_p0 }
   0x8   :  { %221 = shalt.err (!%p218_p2)
}
   0x9   :  { %s222_s21 = scalar_lea.vmem %s17_s13, 256  ;;  %p227_p4 = scmp.lt.s32.totalorder %s17_s13, %s17_s13 }
   0xa   :  { %p223_p3 = scmp.ne.s32.totalorder %s17_s13, %s222_s21  ;;  %p228_p5 = scmp.lt.s32.totalorder %s222_s21, %s222_s21 }
   0xc   :  { %p229_p6 = por %p228_p5, %p227_p4 }
   0xe   :  { %p230_p7 = pnand %p229_p6, %p223_p3 }
  0x10   :  { %233 = shalt.err (!%p230_p7)
}
  0x11   :  { %s285_s22 = smov 128   ;;  %s286_s23 = smov 8  }
  0x12   :  { %22 = dma.hbm_to_vmem [thread:$0]  %s357_s0, 256, %s17_s13, [#allocation3], %s285_s22, %s285_s22, %s286_s23  }
  0x13   :  { %s287_s26 = smov [#allocation5]   ;;  %s234_s30 = scalar_lea.hbm %s358_s1, 512 }
  0x14   :  { %s28_s27 = sshll.u32 %s287_s26, 4  ;;  %p235_p8 = scmp.ne.s32.totalorder %s358_s1, %s234_s30  ;;  %s29_s27 = int_to_ptr.vmem [resolvable:$true] %s28_s27 }
  0x15   :  { %p238_p9 = scmp.lt.u32.totalorder %s234_s30, %s358_s1 }
  0x17   :  { %p240_p10 = pnand %p238_p9, %p235_p8 }
  0x19   :  { %243 = shalt.err (!%p240_p10)
}
  0x1a   :  { %s244_s8 = scalar_lea.vmem %s29_s27, 512  ;;  %p249_p12 = scmp.lt.s32.totalorder %s29_s27, %s29_s27 }
  0x1b   :  { %p245_p11 = scmp.ne.s32.totalorder %s29_s27, %s244_s8  ;;  %p250_p13 = scmp.lt.s32.totalorder %s244_s8, %s244_s8 }
  0x1d   :  { %p251_p0 = por %p250_p13, %p249_p12 }
  0x1f   :  { %p252_p1 = pnand %p251_p0, %p245_p11 }
  0x21   :  { %255 = shalt.err (!%p252_p1)
}
  0x22   :  { %34 = dma.hbm_to_vmem [thread:$0]  %s358_s1, 512, %s29_s27, [#allocation6], %s285_s22, %s285_s22, %s286_s23  }
  0x23   :  { %278 = dma.done.wait [#allocation3], 256  }
  0x24   :  { %279 = vsyncadd [#allocation3], 4294967040 }
  0x25   :  { %280 = dma.done.wait [#allocation6], 512  }
  0x26   :  { %281 = vsyncadd [#allocation6], 4294966784  ;;  %vm56_vm0 = vcmask 523264   ;;  %v45_v0 = vld [vmem:[#allocation5] sm:$0xff]  ;;  %v46_v1 = vld [vmem:[#allocation5 + $0x8] sm:$0xff]  ;;  %s288_s11 = smov [#allocation7]  }
  0x27   :  { %vm196_vm1 = vmpackc.low %vm56_vm0, %vm56_vm0  ;;  %v47_v2 = vld [vmem:[#allocation5 + $0x10] sm:$0xff]  ;;  %v195_v3 = vpack.c.bf16 %v46_v1, %v45_v0  ;;  %v48_v4 = vld [vmem:[#allocation5 + $0x18] sm:$0xff]  ;;  %s158_s12 = sshll.u32 %s288_s11, 4  ;;  %vm150_vm2 = vcmask 261120   ;;  %s159_s12 = int_to_ptr.vmem [resolvable:$true] %s158_s12 }
  0x28   :  { %v43_v5 = vld [vmem:[#allocation2] sm:$0xff]  ;;  %v201_v6 = vpack.c.bf16 %v48_v4, %v47_v2  ;;  %v44_v7 = vld [vmem:[#allocation2 + $0x8] sm:$0xff]  ;;  %s256_s13 = scalar_lea.vmem %s159_s12, 256  ;;  %p261_p3 = scmp.lt.s32.totalorder %s159_s12, %s159_s12 }
  0x29   :  { %192 = vmatprep.mubr.msk.f32.mxu0 %vm56_vm0, %v43_v5  ;;  %197 = vmatprep.subr.msk.bf16.mxu0 %vm196_vm1, %v195_v3  ;;  %v171_v8 = vld [vmem:[%s359_s2] ss:$0 sm:$0xff]  ;;  %p257_p2 = scmp.ne.s32.totalorder %s159_s12, %s256_s13  ;;  %p262_p4 = scmp.lt.s32.totalorder %s256_s13, %s256_s13 }
  0x2a   :  { %200 = vmatpush3.bf16.xpose.msk.msra.mxu0 %vm196_vm1, %v195_v3 }
  0x2b   :  { %203 = vmatprep.subr.msk.bf16.mxu0 %vm196_vm1, %v201_v6  ;;  %p263_p5 = por %p262_p4, %p261_p3 }
  0x2d   :  { %p264_p6 = pnand %p263_p5, %p257_p2 }
  0x32   :  { %206 = vmatpush3.bf16.xpose.msk.msra.mxu0 %vm196_vm1, %v201_v6 }
  0x39   :  { %193 = vmatmul.mubr.msk.f32.vlgmr.msra.gmra.mrb[0].mxu0 %vm56_vm0, %v44_v7 }
 0x10c   :  { %v194_v9 = vpop.f32.mrb[0].mxu0 }
 0x10d   :  { %v147_v10 = vadd.f32 %v194_v9, %v171_v8  ;;  %v141_v11 = vpop.f32.mrb[1].mxu0 }
 0x10e   :  { %v142_v12 = vadd.f32 %v171_v8, %v141_v11 }
 0x10f   :  { %152 = vst.msk [vmem:[#allocation7 + $0x8] sm:$0xff] %vm150_vm2, %v147_v10 }
 0x110   :  { %151 = vst.msk [vmem:[#allocation7] sm:$0xff] %vm150_vm2, %v142_v12 }
 0x111   :  { %267 = shalt.err (!%p264_p6)
}
 0x112   :  { %s268_s2 = scalar_lea.hbm %s360_s3, 256 }
 0x113   :  { %p269_p7 = scmp.ne.s32.totalorder %s360_s3, %s268_s2  ;;  %p272_p8 = scmp.lt.u32.totalorder %s268_s2, %s360_s3 }
 0x115   :  { %p274_p9 = pnand %p272_p8, %p269_p7 }
 0x117   :  { %277 = shalt.err (!%p274_p9)
}
 0x118   :  { %164 = dma.vmem_to_hbm [thread:$0]  %s159_s12, 256, %s360_s3, [#allocation4], %s285_s22, %s285_s22, %s286_s23  }
 0x119   :  { %282 = dma.done.wait [#allocation4], 256  }
 0x11a   :  { %283 = vsyncadd [#allocation4], 4294967040 }
 0x11b   :  { %168 = vsyncpa [#allocation3], 1 }
 0x11c   :  { %169 = vsyncpa [#allocation6], 1 }
 0x11d   :  { %170 = vsyncpa [#allocation4], 1 }

</bundles_post_ra>
